<compile_context>
chip_gen: v5e
topology: v5e:2x2
jax: 0.10.0
libtpu: 0.0.40
codegen_flags: <defaults>
</compile_context>

<pallas_src>
import functools

import jax
import jax.numpy as jnp
from jax import lax
from jax.experimental import pallas as pl
from jax.experimental.pallas import tpu as pltpu

HIDDEN = 64       # logical hidden width of the PyTorch module
HIDDEN_PAD = 128  # padded to a full lane width / MXU column block


def _round_up(x, m):
    return (x + m - 1) // m * m


def mlp_kernel(x_ref, w1_ref, b1_ref, w2_ref, b2_ref, o_ref):
    # Layer 1 on the MXU: [tile_B, D] (bf16) @ [D, 128] (bf16) -> f32 accum.
    h = jnp.dot(x_ref[...], w1_ref[...], preferred_element_type=jnp.float32)
    h = jnp.maximum(h + b1_ref[...], 0.0)  # bias + ReLU in f32 (VPU)

    # Layer 2: contract the 128 hidden lanes of both operands (NT matmul),
    # producing a lane-dense (1, tile_B) row directly.  This avoids both an
    # N=1 matmul and a width-1 masked / strided output store.
    out = lax.dot_general(
        w2_ref[...], h,
        dimension_numbers=(((1,), (1,)), ((), ())),
        preferred_element_type=jnp.float32,
    )                                      # (1, tile_B)
    out = out + b2_ref[0, 0]               # scalar bias from SMEM

    o_ref[...] = out[None].astype(o_ref.dtype)   # (1, 1, tile_B)


@functools.partial(jax.jit, static_argnames=("tile_b", "compute_dtype"))
def kickstarter_mlp(x, w1, b1, w2, b2, *, tile_b=2048,
                    compute_dtype=jnp.bfloat16):
    """Forward pass of KickstarterMLP.

    x : [B, D] float32
    w1: [D, 64]  (torch W1.T),  b1: [1, 64]
    w2: [64, 1]  (torch W2.T),  b2: [1, 1]
    returns [B, 1] float32
    """
    B, D = x.shape
    H = w1.shape[1]
    assert w1.shape == (D, H)
    b1 = b1.reshape(1, H).astype(jnp.float32)
    w2 = w2.reshape(H, 1).astype(jnp.float32)
    b2 = b2.reshape(1, 1).astype(jnp.float32)

    # Pad hidden 64 -> 128 with zeros (exactly preserves the result).
    hp = HIDDEN_PAD
    w1p = jnp.pad(w1, ((0, 0), (0, hp - H))).astype(compute_dtype)
    b1p = jnp.pad(b1, ((0, 0), (0, hp - H)))
    w2row = jnp.pad(w2.T, ((0, 0), (0, hp - H)))          # (1, 128) f32

    # Batch tiling: keep tile_b a multiple of 128 so the lane-dense output
    # block stays aligned; pad B up to a whole number of tiles.
    tile_b = min(tile_b, _round_up(B, 128))
    g = pl.cdiv(B, tile_b)
    b_pad = g * tile_b
    x_pad = jnp.pad(x, ((0, b_pad - B), (0, 0))).astype(compute_dtype)

    out = pl.pallas_call(
        mlp_kernel,
        out_shape=jax.ShapeDtypeStruct((g, 1, tile_b), jnp.float32),
        grid=(g,),
        in_specs=[
            # x streamed one batch tile per grid step (auto double-buffered).
            pl.BlockSpec((tile_b, D), lambda i: (i, 0)),
            # Weights / biases: constant block index -> fetched once, resident.
            pl.BlockSpec((D, hp), lambda i: (0, 0)),
            pl.BlockSpec((1, hp), lambda i: (0, 0)),
            pl.BlockSpec((1, hp), lambda i: (0, 0)),
            # Scalar output bias lives in SMEM.
            pl.BlockSpec(memory_space=pltpu.MemorySpace.SMEM),
        ],
        out_specs=pl.BlockSpec((1, 1, tile_b), lambda i: (i, 0, 0)),
        compiler_params=pltpu.CompilerParams(
            dimension_semantics=("parallel",),   # shard batch tiles across TCs
        ),
    )(x_pad, w1p, b1p, w2row, b2)

    # (g, 1, tile_b) -> (g*tile_b, 1) -> drop batch padding.
    return out.reshape(-1, 1)[:B]


def init_params(input_dim, hidden=HIDDEN, seed=0):
    """Deterministic PyTorch-style (uniform +/- 1/sqrt(fan_in)) init."""
    k = jax.random.PRNGKey(seed)
    k1, k2, k3, k4 = jax.random.split(k, 4)
    bound1 = 1.0 / jnp.sqrt(jnp.float32(input_dim))
    bound2 = 1.0 / jnp.sqrt(jnp.float32(hidden))
    # stored as (in_features, out_features), i.e. transposed vs torch's (out, in)
    w1 = jax.random.uniform(k1, (input_dim, hidden), jnp.float32, -bound1, bound1)
    b1 = jax.random.uniform(k2, (1, hidden), jnp.float32, -bound1, bound1)
    w2 = jax.random.uniform(k3, (hidden, 1), jnp.float32, -bound2, bound2)
    b2 = jax.random.uniform(k4, (1, 1), jnp.float32, -bound2, bound2)
    return w1, b1, w2, b2


def reference_forward(x, w1, b1, w2, b2):
    hi = jax.lax.Precision.HIGHEST
    h = jnp.maximum(jnp.dot(x, w1, precision=hi) + b1, 0.0)
    return jnp.dot(h, w2, precision=hi) + b2


if __name__ == "__main__":
    batch, input_dim = 8, 32
    key = jax.random.PRNGKey(0)
    x = jax.random.normal(key, (batch, input_dim), jnp.float32)

    w1, b1, w2, b2 = init_params(input_dim)

    out = kickstarter_mlp(x, w1, b1, w2, b2)
    out = jax.block_until_ready(out)
    assert out.shape == (batch, 1)

    # Full-f32 reference (original module semantics).  The kernel uses bf16
    # inputs with f32 accumulation, so allow for bf16 input-rounding error.
    ref = reference_forward(x, w1, b1, w2, b2)
    assert jnp.all(jnp.isfinite(out))
    assert jnp.allclose(out, ref, atol=2e-2, rtol=2e-2)

    print("KERNEL_OK")
</pallas_src>

<mosaic_0001>
module attributes {stable_mosaic.version = 11 : i64} {
  func.func @mlp_kernel(%arg0: i32, %arg1: memref<128x32xbf16, #tpu.memory_space<vmem>>, %arg2: memref<32x128xbf16, #tpu.memory_space<vmem>>, %arg3: memref<1x128xf32, #tpu.memory_space<vmem>>, %arg4: memref<1x128xf32, #tpu.memory_space<vmem>>, %arg5: memref<1x1xf32, #tpu.memory_space<smem>>, %arg6: memref<1x1x128xf32, #tpu.memory_space<vmem>>) attributes {dimension_semantics = [#tpu.dimension_semantics<parallel>], iteration_bounds = array<i64: 1>, scalar_prefetch = 0 : i64, scratch_operands = 0 : i64, tpu.core_type = #tpu.core_type<tc>, window_params = [{transform_indices = @transform_0, window_bounds = array<i64: 128, 32>}, {pipeline_mode = #tpu.pipeline_mode<synchronous>, transform_indices = @transform_1, window_bounds = array<i64: 32, 128>}, {pipeline_mode = #tpu.pipeline_mode<synchronous>, transform_indices = @transform_2, window_bounds = array<i64: 1, 128>}, {pipeline_mode = #tpu.pipeline_mode<synchronous>, transform_indices = @transform_3, window_bounds = array<i64: 1, 128>}, {transform_indices = @transform_4, window_bounds = array<i64: 1, 1>}, {transform_indices = @transform_5, window_bounds = array<i64: 1, 1, 128>}]} {
    %c0 = arith.constant 0 : index
    %c0_0 = arith.constant 0 : index
    %0 = vector.load %arg1[%c0, %c0_0] : memref<128x32xbf16, #tpu.memory_space<vmem>>, vector<128x32xbf16>
    %c0_1 = arith.constant 0 : index
    %c0_2 = arith.constant 0 : index
    %1 = vector.load %arg2[%c0_1, %c0_2] : memref<32x128xbf16, #tpu.memory_space<vmem>>, vector<32x128xbf16>
    %cst = arith.constant dense<0.000000e+00> : vector<128x128xf32>
    %2 = tpu.matmul %0, %1, %cst {dimension_numbers = #tpu.dot_dimension_numbers<[1], [0], [0], [1], [0, 0, 1, 1], [], []>} : vector<128x32xbf16>, vector<32x128xbf16>, vector<128x128xf32> -> vector<128x128xf32>
    %c0_3 = arith.constant 0 : index
    %c0_4 = arith.constant 0 : index
    %3 = vector.load %arg3[%c0_3, %c0_4] : memref<1x128xf32, #tpu.memory_space<vmem>>, vector<1x128xf32>
    %4 = vector.broadcast %3 : vector<1x128xf32> to vector<128x128xf32>
    %5 = arith.addf %2, %4 : vector<128x128xf32>
    %cst_5 = arith.constant 0.000000e+00 : f32
    %6 = vector.broadcast %cst_5 : f32 to vector<128x128xf32>
    %7 = arith.maximumf %5, %6 : vector<128x128xf32>
    %c0_6 = arith.constant 0 : index
    %c0_7 = arith.constant 0 : index
    %8 = vector.load %arg4[%c0_6, %c0_7] : memref<1x128xf32, #tpu.memory_space<vmem>>, vector<1x128xf32>
    %cst_8 = arith.constant dense<0.000000e+00> : vector<1x128xf32>
    %9 = tpu.matmul %8, %7, %cst_8 {dimension_numbers = #tpu.dot_dimension_numbers<[1], [1], [0], [0], [0, 0, 1, 0], [], []>} : vector<1x128xf32>, vector<128x128xf32>, vector<1x128xf32> -> vector<1x128xf32>
    %c0_9 = arith.constant 0 : index
    %c0_10 = arith.constant 0 : index
    %10 = memref.load %arg5[%c0_9, %c0_10] : memref<1x1xf32, #tpu.memory_space<smem>>
    %11 = vector.broadcast %10 : f32 to vector<1x128xf32>
    %12 = arith.addf %9, %11 : vector<1x128xf32>
    %13 = vector.shape_cast %12 : vector<1x128xf32> to vector<1x1x128xf32>
    %c0_11 = arith.constant 0 : index
    %c0_12 = arith.constant 0 : index
    %c0_13 = arith.constant 0 : index
    %14 = vector.load %arg6[%c0_11, %c0_12, %c0_13] : memref<1x1x128xf32, #tpu.memory_space<vmem>>, vector<1x1x128xf32>
    tpu.vector_store %arg6[%c0_11, %c0_12, %c0_13], %13 {strides = array<i32>} : memref<1x1x128xf32, #tpu.memory_space<vmem>>, vector<1x1x128xf32>,
    return
  }
  func.func @transform_0(%arg0: i32) -> (i32, i32) {
    %c0_i32 = arith.constant 0 : i32
    %c0_i32_0 = arith.constant 0 : i32
    return %arg0, %c0_i32 : i32, i32
  }
  func.func @transform_1(%arg0: i32) -> (i32, i32) {
    %c0_i32 = arith.constant 0 : i32
    %c0_i32_0 = arith.constant 0 : i32
    %c0_i32_1 = arith.constant 0 : i32
    return %c0_i32, %c0_i32_0 : i32, i32
  }
  func.func @transform_2(%arg0: i32) -> (i32, i32) {
    %c0_i32 = arith.constant 0 : i32
    %c0_i32_0 = arith.constant 0 : i32
    %c0_i32_1 = arith.constant 0 : i32
    return %c0_i32, %c0_i32_0 : i32, i32
  }
  func.func @transform_3(%arg0: i32) -> (i32, i32) {
    %c0_i32 = arith.constant 0 : i32
    %c0_i32_0 = arith.constant 0 : i32
    %c0_i32_1 = arith.constant 0 : i32
    return %c0_i32, %c0_i32_0 : i32, i32
  }
  func.func @transform_4(%arg0: i32) -> (i32, i32) {
    %c0_i32 = arith.constant 0 : i32
    %c0_i32_0 = arith.constant 0 : i32
    %c0_i32_1 = arith.constant 0 : i32
    return %c0_i32, %c0_i32_0 : i32, i32
  }
  func.func @transform_5(%arg0: i32) -> (i32, i32, i32) {
    %c0_i32 = arith.constant 0 : i32
    %c0_i32_0 = arith.constant 0 : i32
    %c0_i32_1 = arith.constant 0 : i32
    return %arg0, %c0_i32, %c0_i32_0 : i32, i32, i32
  }
}

</mosaic_0001>

<bundles_post_ra>
// kernel: kickstarter_mlp.1
= control target key start
LH: loop header
LB: loop body
LE: loop exit
PB: predicated region body
PF: predicated region fallthrough
CT: control target
= control target key end

     0   :  { %vm98_vm0 = vcmask 261120   ;;  %s351_s1 = inlined_call_operand.vmem [shape: bf16[32,128], index: 1, kind: input, shape index: {}]   ;;  %s352_s2 = inlined_call_operand.vmem [shape: f32[1,128], index: 2, kind: input, shape index: {}]   ;;  %s353_s0 = inlined_call_operand.vmem [shape: bf16[128,32], index: 0, kind: input, shape index: {}]   ;;  %s354_s3 = inlined_call_operand.vmem [shape: f32[1,128], index: 3, kind: input, shape index: {}]   ;;  %s355_s4 = inlined_call_operand.<no memory space> [shape: f32[1,1], index: 4, kind: input, shape index: {}]   ;;  %s356_s5 = inlined_call_operand.vmem [shape: f32[1,1,128], index: 5, kind: output, shape index: {}]  }
   0x1   :  { %v273_v0 = vld [vmem:[%s351_s1 + $0x8] sm:$0xff]  ;;  %v272_v1 = vld [vmem:[%s351_s1] sm:$0xff]  ;;  %v267_v2 = vld [vmem:[%s353_s0 + $0x18] sm:$0xff]  ;;  %v190_v60 = vstv %s355_s4 }
   0x2   :  { %274 = vmatpush.bf16.msra.mxu2 %v273_v0  ;;  %275 = vmatpush.bf16.msra.mxu3 %v273_v0  ;;  %v270_v3 = vld [vmem:[%s353_s0 + $0x30] sm:$0xff]  ;;  %v264_v4 = vld [vmem:[%s353_s0] sm:$0xff]  ;;  %v271_v6 = vld [vmem:[%s353_s0 + $0x38] sm:$0xff] }
   0x3   :  { %129 = vmatpush.bf16.msra.mxu0 %v273_v0  ;;  %v268_v5 = vld [vmem:[%s353_s0 + $0x20] sm:$0xff]  ;;  %v265_v7 = vld [vmem:[%s353_s0 + $0x8] sm:$0xff]  ;;  %v266_v9 = vld [vmem:[%s353_s0 + $0x10] sm:$0xff] }
   0x4   :  { %v269_v8 = vld [vmem:[%s353_s0 + $0x28] sm:$0xff]  ;;  %v278_v18 = vld [vmem:[%s352_s2] ss:$0 sm:$0xff] }
   0x5   :  { %v188_v59 = vld [vmem:[%s354_s3] sm:$0x1] }
   0x6   :  { %276 = vmatpush.bf16.msra.mxu2 %v272_v1  ;;  %277 = vmatpush.bf16.msra.mxu3 %v272_v1 }
   0x7   :  { %130 = vmatpush.bf16.msra.mxu0 %v272_v1 }
   0x9   :  { %259 = vmatmul.msk.bf16.vlgmr.msra.gmra.mxu2 %vm98_vm0, %v267_v2  ;;  %262 = vmatmul.msk.bf16.vlgmr.msra.gmra.mxu3 %vm98_vm0, %v270_v3 }
   0xa   :  { %256 = vmatmul.msk.bf16.vlgmr.msra.gmra.mxu0 %vm98_vm0, %v264_v4 }
  0x19   :  { %260 = vmatmul.msk.bf16.gmra.mxu2 %vm98_vm0, %v268_v5  ;;  %263 = vmatmul.msk.bf16.gmra.mxu3 %vm98_vm0, %v271_v6 }
  0x1a   :  { %257 = vmatmul.msk.bf16.gmra.mxu0 %vm98_vm0, %v265_v7 }
  0x29   :  { %261 = vmatmul.msk.bf16.gmra.mxu2 %vm98_vm0, %v269_v8 }
  0x2a   :  { %258 = vmatmul.msk.bf16.gmra.mxu0 %vm98_vm0, %v266_v9 }
  0x87   :  { %v132_v14 = vpop.f32.mrf.mxu0 }
  0x88   :  { %v133_v56 = vadd.f32 %v278_v18, %v132_v14 }
  0x8a   :  { %v172_v58 = vmax.f32 %v133_v56, 0.0 }
  0x8c   :  { %v147_v10 = vpop.f32.mrf.mxu2  ;;  %v162_v11 = vpop.f32.mrf.mxu3 }
  0x8d   :  { %v163_v28 = vadd.f32 %v278_v18, %v162_v11  ;;  %v148_v43 = vadd.f32 %v278_v18, %v147_v10 }
  0x8f   :  { %v134_v17 = vpop.f32.mrf.mxu0  ;;  %v184_v30 = vmax.f32 %v163_v28, 0.0  ;;  %v178_v46 = vmax.f32 %v148_v43, 0.0 }
  0x90   :  { %v135_v54 = vadd.f32 %v278_v18, %v134_v17 }
  0x92   :  { %v173_v57 = vmax.f32 %v135_v54, 0.0 }
  0x94   :  { %v149_v12 = vpop.f32.mrf.mxu2  ;;  %v164_v13 = vpop.f32.mrf.mxu3 }
  0x95   :  { %v165_v25 = vadd.f32 %v278_v18, %v164_v13  ;;  %v150_v41 = vadd.f32 %v278_v18, %v149_v12 }
  0x97   :  { %v137_v24 = vpop.f32.mrf.mxu0  ;;  %v185_v29 = vmax.f32 %v165_v25, 0.0  ;;  %v179_v44 = vmax.f32 %v150_v41, 0.0 }
  0x98   :  { %v138_v52 = vadd.f32 %v278_v18, %v137_v24 }
  0x9a   :  { %v174_v55 = vmax.f32 %v138_v52, 0.0 }
  0x9c   :  { %v152_v15 = vpop.f32.mrf.mxu2  ;;  %v167_v16 = vpop.f32.mrf.mxu3 }
  0x9d   :  { %v168_v22 = vadd.f32 %v278_v18, %v167_v16  ;;  %v153_v39 = vadd.f32 %v278_v18, %v152_v15 }
  0x9f   :  { %v186_v26 = vmax.f32 %v168_v22, 0.0  ;;  %v139_v31 = vpop.f32.mrf.mxu0  ;;  %v180_v42 = vmax.f32 %v153_v39, 0.0 }
  0xa0   :  { %v140_v50 = vadd.f32 %v278_v18, %v139_v31 }
  0xa2   :  { %v175_v53 = vmax.f32 %v140_v50, 0.0 }
  0xa4   :  { %v154_v19 = vpop.f32.mrf.mxu2  ;;  %v169_v20 = vpop.f32.mrf.mxu3 }
  0xa5   :  { %v170_v21 = vadd.f32 %v278_v18, %v169_v20  ;;  %v155_v36 = vadd.f32 %v278_v18, %v154_v19 }
  0xa7   :  { %v187_v23 = vmax.f32 %v170_v21, 0.0  ;;  %v142_v38 = vpop.f32.mrf.mxu0  ;;  %v181_v40 = vmax.f32 %v155_v36, 0.0 }
  0xa8   :  { %v143_v48 = vadd.f32 %v278_v18, %v142_v38 }
  0xa9   :  { %191 = vmatpush.xpose.msra.mxu1 %v187_v23 }
  0xaa   :  { %v176_v51 = vmax.f32 %v143_v48, 0.0 }
  0xac   :  { %v157_v27 = vpop.f32.mrf.mxu2 }
  0xad   :  { %192 = vmatpush.xpose.msra.mxu1 %v186_v26  ;;  %v158_v34 = vadd.f32 %v278_v18, %v157_v27 }
  0xaf   :  { %v182_v37 = vmax.f32 %v158_v34, 0.0  ;;  %v144_v45 = vpop.f32.mrf.mxu0 }
  0xb0   :  { %v145_v47 = vadd.f32 %v278_v18, %v144_v45 }
  0xb1   :  { %193 = vmatpush.xpose.msra.mxu1 %v185_v29 }
  0xb2   :  { %v177_v49 = vmax.f32 %v145_v47, 0.0 }
  0xb4   :  { %v159_v32 = vpop.f32.mrf.mxu2 }
  0xb5   :  { %v160_v33 = vadd.f32 %v278_v18, %v159_v32  ;;  %194 = vmatpush.xpose.msra.mxu1 %v184_v30 }
  0xb7   :  { %v183_v35 = vmax.f32 %v160_v33, 0.0 }
  0xb9   :  { %195 = vmatpush.xpose.msra.mxu1 %v183_v35 }
  0xbd   :  { %196 = vmatpush.xpose.msra.mxu1 %v182_v37 }
  0xc1   :  { %197 = vmatpush.xpose.msra.mxu1 %v181_v40 }
  0xc5   :  { %198 = vmatpush.xpose.msra.mxu1 %v180_v42 }
  0xc9   :  { %199 = vmatpush.xpose.msra.mxu1 %v179_v44 }
  0xcd   :  { %200 = vmatpush.xpose.msra.mxu1 %v178_v46 }
  0xd1   :  { %201 = vmatpush.xpose.msra.mxu1 %v177_v49 }
  0xd5   :  { %202 = vmatpush.xpose.msra.mxu1 %v176_v51 }
  0xd9   :  { %203 = vmatpush.xpose.msra.mxu1 %v175_v53 }
  0xdd   :  { %204 = vmatpush.xpose.msra.mxu1 %v174_v55 }
  0xe1   :  { %205 = vmatpush.xpose.msra.mxu1 %v173_v57 }
  0xe5   :  { %206 = vmatpush.xpose.msra.mxu1 %v172_v58 }
  0xe8   :  { %207 = vmatmul.f32.vlgmr.msra.gmra.mxu1 %v188_v59 }
 0x165   :  { %v208_v61 = vpop.f32.mrf.mxu1 }
 0x166   :  { %v209_v62 = vadd.f32 %v208_v61, %v190_v60 }
 0x168   :  { %211 = vst [vmem:[%s356_s5] sm:$0x1] %v209_v62 }

</bundles_post_ra>
